<compile_context>
chip_gen: v6e
topology: v6e:2x2x1
jax: 0.10.0
libtpu: 0.0.40
codegen_flags: <defaults>
</compile_context>

<pallas_src>
import numpy as np
import jax
import jax.numpy as jnp
from jax.experimental import pallas as pl
from jax.experimental.pallas import tpu as pltpu

BN_EPS = 1e-5  # PyTorch nn.BatchNorm2d default

# Off-center 3x3 taps (oy, ox); the (0, 0) tap is folded with the RepVgg 1x1 branch.
SHIFT_OFFSETS = tuple((oy, ox) for oy in (-1, 0, 1) for ox in (-1, 0, 1)
                      if (oy, ox) != (0, 0))


# ----------------------------------------------------------------------------------
# pltpu.roll direction probe (expected to match np.roll; probed once so a convention
# flip can never silently mirror the 3x3 kernel spatially).
# ----------------------------------------------------------------------------------
_ROLL_LIKE_NUMPY = None


def _roll_matches_numpy():
    global _ROLL_LIKE_NUMPY
    if _ROLL_LIKE_NUMPY is None:
        def probe(x_ref, o_ref):
            o_ref[...] = pltpu.roll(x_ref[...], 1, 1)

        x = jnp.tile(jnp.arange(128, dtype=jnp.float32), (8, 1))
        y = pl.pallas_call(
            probe, out_shape=jax.ShapeDtypeStruct((8, 128), jnp.float32))(x)
        # np.roll(x, 1, axis=1)[0, 0] == 127; the opposite convention gives 1.
        _ROLL_LIKE_NUMPY = bool(np.asarray(y)[0, 0] == 127.0)
    return _ROLL_LIKE_NUMPY


# ----------------------------------------------------------------------------------
# Pallas kernel
# ----------------------------------------------------------------------------------
def make_csprep_kernel(num_blocks, hidden, has_conv3, img_w, lanes, roll_like_numpy):
    def tap_shift(d):
        # We want shifted[:, p] = x[:, (p + d) % lanes].
        return (-d) % lanes if roll_like_numpy else d % lanes

    def kernel(x_ref, w_stem_ref, b_stem_ref, w_blk_ref, b_blk_ref, mask_ref, *rest):
        if has_conv3:
            w_out_ref, b_out_ref, out_ref = rest
        else:
            (out_ref,) = rest

        def mm(a, b):            # bf16 x bf16 operands, f32 accumulation on the MXU
            return jnp.dot(a, b, preferred_element_type=jnp.float32)

        def silu(v):             # v * sigmoid(v); exp + approx reciprocal -> EUP slot
            return v * pl.reciprocal(1.0 + jnp.exp(-v), approx=True)

        # Fused conv1 + conv2 stem: one (2*hidden, c_in) @ (c_in, lanes) matmul.
        stem = silu(mm(w_stem_ref[...], x_ref[...]) + b_stem_ref[...])
        x1 = stem[:hidden, :]                                  # (hidden, lanes) f32
        x2 = stem[hidden:, :]

        # RepVgg bottlenecks: per block, 8 lane-rolls + masks build the shifted copies,
        # then ONE matmul with K = 9*hidden consumes all taps (center tap carries the
        # folded 1x1 branch).
        for blk in range(num_blocks):
            x1b = x1.astype(jnp.bfloat16)
            pieces = [x1b]                                     # center tap + 1x1 branch
            for t, (oy, ox) in enumerate(SHIFT_OFFSETS):       # 8 off-center taps
                d = oy * img_w + ox                            # flat source offset
                shifted = pltpu.roll(x1b, tap_shift(d), 1) * mask_ref[t]
                pieces.append(shifted)
            cat = jnp.concatenate(pieces, axis=0)              # (9*hidden, lanes) bf16
            x1 = silu(mm(w_blk_ref[blk], cat) + b_blk_ref[blk])

        y = x1 + x2
        if has_conv3:                                          # only when hidden != out
            y = silu(mm(w_out_ref[...], y.astype(jnp.bfloat16)) + b_out_ref[...])
        out_ref[...] = y.astype(out_ref.dtype)

    return kernel


# ----------------------------------------------------------------------------------
# Wrapper
# ----------------------------------------------------------------------------------
def make_tap_masks(H, W, images_per_block):
    """(n_taps, 1, images_per_block*H*W) bf16; mask[t, 0, p] = 1 iff output position p
    has an in-image source for tap t (zeroes everything the circular roll wraps)."""
    HW = H * W
    m = np.zeros((len(SHIFT_OFFSETS), HW), np.float32)
    for t, (oy, ox) in enumerate(SHIFT_OFFSETS):
        for h in range(H):
            if not 0 <= h + oy < H:
                continue
            for w in range(W):
                if 0 <= w + ox < W:
                    m[t, h * W + w] = 1.0
    m = np.tile(m, (1, images_per_block))[:, None, :]
    return jnp.asarray(m, dtype=jnp.bfloat16)


def csprep_forward(x_nchw, packed, images_per_block=None):
    """Fused CSPRepLayer forward.  x_nchw: (B, C_in, H, W) float32."""
    B, c_in, H, W = x_nchw.shape
    HW = H * W
    if images_per_block is None:
        images_per_block = B            # fold whole batch into lanes -> grid=(1,)
    assert B % images_per_block == 0
    lanes = images_per_block * HW
    assert lanes % 128 == 0
    num_chunks = B // images_per_block

    hidden = packed['b_stem'].shape[0] // 2
    num_blocks = packed['w_blk'].shape[0]
    has_conv3 = 'w_out' in packed
    c_out = packed['w_out'].shape[0] if has_conv3 else hidden

    # Lane-dense activation layout: (C, B*H*W), batch folded into the lane axis.
    x_cn = jnp.transpose(x_nchw, (1, 0, 2, 3)).reshape(c_in, B * HW)
    x_cn = x_cn.astype(jnp.bfloat16)
    tap_mask = make_tap_masks(H, W, images_per_block)

    inputs = [x_cn, packed['w_stem'], packed['b_stem'], packed['w_blk'],
              packed['b_blk'], tap_mask]
    if has_conv3:
        inputs += [packed['w_out'], packed['b_out']]

    def const_spec(a):                  # grid-invariant operand (weights/biases/masks)
        nd = a.ndim
        return pl.BlockSpec(a.shape, lambda i, nd=nd: (0,) * nd)

    in_specs = ([pl.BlockSpec((c_in, lanes), lambda i: (0, i))]
                + [const_spec(a) for a in inputs[1:]])
    out_specs = pl.BlockSpec((c_out, lanes), lambda i: (0, i))

    # Advisory cost estimate for the XLA scheduler.
    flops = int(2 * B * HW * (2 * hidden * c_in
                              + num_blocks * hidden * 9 * hidden
                              + (c_out * hidden if has_conv3 else 0)))
    transcendentals = int(B * HW * (2 * hidden + num_blocks * hidden
                                    + (c_out if has_conv3 else 0)))
    bytes_accessed = int(sum(int(a.size) * a.dtype.itemsize for a in inputs)
                         + B * HW * c_out * 4)

    out = pl.pallas_call(
        make_csprep_kernel(num_blocks, hidden, has_conv3, W, lanes,
                           roll_like_numpy=_roll_matches_numpy()),
        out_shape=jax.ShapeDtypeStruct((c_out, B * HW), jnp.float32),
        grid=(num_chunks,),
        in_specs=in_specs,
        out_specs=out_specs,
        compiler_params=pltpu.CompilerParams(dimension_semantics=("parallel",)),
        cost_estimate=pl.CostEstimate(flops=flops, transcendentals=transcendentals,
                                      bytes_accessed=bytes_accessed),
    )(*inputs)
    return out.reshape(c_out, B, H, W).transpose(1, 0, 2, 3)


# ----------------------------------------------------------------------------------
# Parameter construction and BN folding / packing
# ----------------------------------------------------------------------------------
def _fold_conv_bn(w, bn):
    """Fold eval-mode BatchNorm into conv weight/bias (same math as RepVgg fusion)."""
    gamma, beta, mean, var = bn
    inv = gamma / jnp.sqrt(var + BN_EPS)
    return w * inv[:, None, None, None], beta - mean * inv


def pack_params(raw):
    w1f, b1f = _fold_conv_bn(raw['conv1']['w'], raw['conv1']['bn'])
    w2f, b2f = _fold_conv_bn(raw['conv2']['w'], raw['conv2']['bn'])
    # conv1 & conv2 stacked along M -> single stem matmul.
    w_stem = jnp.concatenate([w1f[:, :, 0, 0], w2f[:, :, 0, 0]], axis=0)
    b_stem = jnp.concatenate([b1f, b2f], axis=0)[:, None]              # (2*hidden, 1)

    w_blk, b_blk = [], []
    for blk in raw['blocks']:
        w3f, b3f = _fold_conv_bn(blk['w3'], blk['bn3'])
        wbf, bbf = _fold_conv_bn(blk['w1'], blk['bn1'])
        center = w3f[:, :, 1, 1] + wbf[:, :, 0, 0]                     # center tap + 1x1
        taps = [center] + [w3f[:, :, oy + 1, ox + 1] for oy, ox in SHIFT_OFFSETS]
        w_blk.append(jnp.concatenate(taps, axis=1))                    # (hidden, 9*hidden)
        b_blk.append((b3f + bbf)[:, None])

    packed = {
        'w_stem': w_stem.astype(jnp.bfloat16),                         # (2*hidden, c_in)
        'b_stem': b_stem,                                              # f32
        'w_blk': jnp.stack(w_blk, 0).astype(jnp.bfloat16),             # (nb, hidden, 9*hidden)
        'b_blk': jnp.stack(b_blk, 0),                                  # (nb, hidden, 1) f32
    }
    if 'conv3' in raw:
        w3f, b3f = _fold_conv_bn(raw['conv3']['w'], raw['conv3']['bn'])
        packed['w_out'] = w3f[:, :, 0, 0].astype(jnp.bfloat16)         # (c_out, hidden)
        packed['b_out'] = b3f[:, None]                                 # (c_out, 1) f32
    return packed


def make_raw_params(key, c_in, c_out, hidden, num_blocks):
    keys = iter(jax.random.split(key, 64))

    def conv_w(co, ci, k):
        return 0.1 * jax.random.normal(next(keys), (co, ci, k, k), jnp.float32)

    def bn(c):
        gamma = 1.0 + 0.1 * jax.random.normal(next(keys), (c,), jnp.float32)
        beta = 0.1 * jax.random.normal(next(keys), (c,), jnp.float32)
        mean = 0.1 * jax.random.normal(next(keys), (c,), jnp.float32)
        var = 0.5 + jax.random.uniform(next(keys), (c,), jnp.float32)
        return (gamma, beta, mean, var)

    raw = {
        'conv1': {'w': conv_w(hidden, c_in, 1), 'bn': bn(hidden)},
        'conv2': {'w': conv_w(hidden, c_in, 1), 'bn': bn(hidden)},
        'blocks': [{'w3': conv_w(hidden, hidden, 3), 'bn3': bn(hidden),
                    'w1': conv_w(hidden, hidden, 1), 'bn1': bn(hidden)}
                   for _ in range(num_blocks)],
    }
    if hidden != c_out:
        raw['conv3'] = {'w': conv_w(c_out, hidden, 1), 'bn': bn(c_out)}
    return raw


# ----------------------------------------------------------------------------------
# Pure-JAX reference (mirrors the PyTorch module, eval mode)
# ----------------------------------------------------------------------------------
def _conv_bn_ref(x, w, bn, pad):
    y = jax.lax.conv_general_dilated(
        x, w, window_strides=(1, 1), padding=pad,
        dimension_numbers=('NCHW', 'OIHW', 'NCHW'),
        precision=jax.lax.Precision.HIGHEST)
    gamma, beta, mean, var = bn
    inv = gamma / jnp.sqrt(var + BN_EPS)
    return y * inv[None, :, None, None] + (beta - mean * inv)[None, :, None, None]


def csprep_reference(x, raw):
    silu = lambda v: v * jax.nn.sigmoid(v)
    p0, p1 = ((0, 0), (0, 0)), ((1, 1), (1, 1))
    x1 = silu(_conv_bn_ref(x, raw['conv1']['w'], raw['conv1']['bn'], p0))
    x2 = silu(_conv_bn_ref(x, raw['conv2']['w'], raw['conv2']['bn'], p0))
    for blk in raw['blocks']:
        y = (_conv_bn_ref(x1, blk['w3'], blk['bn3'], p1)
             + _conv_bn_ref(x1, blk['w1'], blk['bn1'], p0))
        x1 = silu(y)
    y = x1 + x2
    if 'conv3' in raw:
        y = silu(_conv_bn_ref(y, raw['conv3']['w'], raw['conv3']['bn'], p0))
    return y


# ----------------------------------------------------------------------------------
if __name__ == "__main__":
    key = jax.random.PRNGKey(0)
    B, H, W = 2, 16, 16

    configs = [
        # (in_channels, out_channels, expansion, num_blocks)
        (16, 16, 1.0, 3),   # hidden == out -> conv3 = Identity
        (16, 32, 0.5, 2),   # hidden != out -> conv3 is ConvNormLayer(1x1 + BN + SiLU)
    ]

    for idx, (c_in, c_out, expansion, num_blocks) in enumerate(configs):
        kp, kx = jax.random.split(jax.random.fold_in(key, idx))
        hidden = int(c_out * expansion)
        raw = make_raw_params(kp, c_in, c_out, hidden, num_blocks)
        x = jax.random.normal(kx, (B, c_in, H, W), jnp.float32)

        out = csprep_forward(x, pack_params(raw))
        out = jax.block_until_ready(out)
        assert out.shape == (B, c_out, H, W)

        ref = csprep_reference(x, raw)
        # Tolerance sized for bf16 matmul operands with f32 accumulation.
        np.testing.assert_allclose(np.asarray(out), np.asarray(ref),
                                   rtol=2e-2, atol=2e-2)

    print("KERNEL_OK")
</pallas_src>

<mosaic_0001>
module attributes {stable_mosaic.version = 11 : i64} {
  func.func @probe(%arg0: memref<8x128xf32, #tpu.memory_space<vmem>>, %arg1: memref<8x128xf32, #tpu.memory_space<vmem>>) attributes {dimension_semantics = [], scalar_prefetch = 0 : i64, scratch_operands = 0 : i64, tpu.core_type = #tpu.core_type<tc>} {
    %c0 = arith.constant 0 : index
    %c0_0 = arith.constant 0 : index
    %0 = vector.load %arg0[%c0, %c0_0] : memref<8x128xf32, #tpu.memory_space<vmem>>, vector<8x128xf32>
    %c1_i32 = arith.constant 1 : i32
    %1 = tpu.dynamic_rotate %0 by %c1_i32 dim 1 : vector<8x128xf32>, i32 -> vector<8x128xf32>
    %c0_1 = arith.constant 0 : index
    %c0_2 = arith.constant 0 : index
    %2 = vector.load %arg1[%c0_1, %c0_2] : memref<8x128xf32, #tpu.memory_space<vmem>>, vector<8x128xf32>
    tpu.vector_store %arg1[%c0_1, %c0_2], %1 {strides = array<i32>} : memref<8x128xf32, #tpu.memory_space<vmem>>, vector<8x128xf32>,
    return
  }
}

</mosaic_0001>

<bundles_post_ra>
// kernel: tpu_custom_call.1
= control target key start
LH: loop header
LB: loop body
LE: loop exit
PB: predicated region body
PF: predicated region fallthrough
CT: control target
= control target key end

     0   :  { %6 = vsyncpa [#allocation3], 0  ;;  %s106_s0 = inlined_call_operand.hbm [shape: f32[8,128], index: 0, kind: input, shape index: {}]   ;;  %s107_s1 = inlined_call_operand.hbm [shape: f32[8,128], index: 1, kind: output, shape index: {}]  }
   0x1   :  { %7 = vsyncpa [#allocation4], 0  ;;  %s87_s6 = smov [#allocation2]  }
   0x2   :  { %s14_s7 = sshll.u32 %s87_s6, 4  ;;  %s15_s7 = int_to_ptr.vmem [resolvable:$true] %s14_s7 }
   0x3   :  { %s51_s8 = scalar_lea.vmem %s15_s7, 128  ;;  %p56_p1 = scmp.lt.s32.totalorder %s15_s7, %s15_s7 }
   0x4   :  { %p52_p0 = scmp.ne.s32.totalorder %s15_s7, %s51_s8  ;;  %p57_p2 = scmp.lt.s32.totalorder %s51_s8, %s51_s8 }
   0x6   :  { %p58_p3 = por %p57_p2, %p56_p1 }
   0x8   :  { %p59_p4 = pnand %p58_p3, %p52_p0 }
   0xa   :  { %62 = shalt.err (!%p59_p4)
}
   0xb   :  { %17 = dma.hbm_to_vmem [thread:$0]  %s106_s0, 128, %s15_s7, [#allocation3]  }
   0xc   :  { %83 = dma.done.wait [#allocation3], 128  }
   0xd   :  { %84 = vsyncadd [#allocation3], 4294967168  ;;  %v21_v0 = vld [vmem:[#allocation2] sm:$0xff]  ;;  %s88_s11 = smov 1   ;;  %s89_s12 = smov [#allocation5]  }
   0xe   :  { %22 = vrot.lane.b32.xlu0 %v21_v0, %s88_s11  ;;  %s31_s13 = sshll.u32 %s89_s12, 4  ;;  %s32_s13 = int_to_ptr.vmem [resolvable:$true] %s31_s13 }
   0xf   :  { %s63_s14 = scalar_lea.vmem %s32_s13, 128  ;;  %p68_p6 = scmp.lt.s32.totalorder %s32_s13, %s32_s13 }
  0x10   :  { %p64_p5 = scmp.ne.s32.totalorder %s32_s13, %s63_s14  ;;  %p69_p7 = scmp.lt.s32.totalorder %s63_s14, %s63_s14 }
  0x12   :  { %p70_p8 = por %p69_p7, %p68_p6 }
  0x14   :  { %p71_p9 = pnand %p70_p8, %p64_p5 }
  0x80   :  { %v23_v1 = vpop.permute.xlu0 %22 }
  0x81   :  { %24 = vst [vmem:[#allocation5] sm:$0xff] %v23_v1 }
  0x82   :  { %74 = shalt.err (!%p71_p9)
}
  0x83   :  { %34 = dma.vmem_to_hbm [thread:$0]  %s32_s13, 128, %s107_s1, [#allocation4]  }
  0x84   :  { %85 = dma.done.wait [#allocation4], 128  }
  0x85   :  { %86 = vsyncadd [#allocation4], 4294967168 }
  0x86   :  { %38 = vsyncpa [#allocation3], 1 }
  0x87   :  { %39 = vsyncpa [#allocation4], 1 }

</bundles_post_ra>
